<compile_context>
chip_gen: v7x
topology: tpu7x:2x2x1
jax: 0.10.0
libtpu: 0.0.40
codegen_flags: <defaults>
</compile_context>

<pallas_src>
import functools

import jax
import jax.numpy as jnp
import numpy as np
from jax import lax
from jax.experimental import pallas as pl
from jax.experimental.pallas import tpu as pltpu

# ~2 MiB of input bytes per (input, pipeline buffer): near the measured HBM-roofline point on
# v5e/v6e, modest per-step overhead on v7x, and small enough that the f32 intermediates the
# kernel materialises after the upcast fit under the scoped-VMEM limit below.
_TILE_INPUT_BYTES = 2 * 1024 * 1024
# 2 inputs x 2 buffers x 2 MiB + ~3 full-tile f32 temporaries + tiny outputs << 40 MiB;
# 40 MiB > v5e's 16 MiB default scoped limit and < v7x's 64 MiB physical VMEM.
_VMEM_LIMIT_BYTES = 40 * 1024 * 1024


def _kl_rows_kernel(pred_ref, targ_ref, out_ref, *, rows_total, tile_rows, ragged_rows):
    """Main path: grid (N, num_row_tiles), blocks (1, tile_rows, lane).

    Writes one lane-dense (1, 1, lane) f32 partial row-sum per grid step; the per-batch
    `valid` gate and the final (tiny) reduction happen outside the kernel.
    """
    p = pred_ref[...].astype(jnp.float32)          # (1, tile_rows, lane)
    t = targ_ref[...].astype(jnp.float32)

    # KLDivLoss zero-target convention AND finite-prediction exclusion.
    # abs(p) != inf  ==  ~isinf(p): NaN predictions with t > 0 still propagate (PyTorch parity).
    mask = jnp.logical_and(t > 0, jnp.abs(p) != jnp.inf)

    if ragged_rows:  # static: the last row tile reads past R -> exclude the garbage rows
        row = pl.program_id(1) * tile_rows + lax.broadcasted_iota(jnp.int32, p.shape, 1)
        mask = jnp.logical_and(mask, row < rows_total)

    contrib = jnp.where(mask, t * (jnp.log(t) - p), 0.0)
    out_ref[...] = jnp.sum(contrib, axis=1, keepdims=True)     # (1, 1, lane), lane-dense store


def _kl_flat_kernel(pred_ref, targ_ref, out_ref, *, cols_total, tile_cols, ragged_cols):
    """Fallback (D % 128 != 0): grid (num_col_tiles,), blocks (N, tile_cols), no pad copy."""
    p = pred_ref[...].astype(jnp.float32)          # (N, tile_cols)
    t = targ_ref[...].astype(jnp.float32)

    mask = jnp.logical_and(t > 0, jnp.abs(p) != jnp.inf)
    if ragged_cols:  # static: the last column tile reads past D -> exclude garbage columns
        col = pl.program_id(0) * tile_cols + lax.broadcasted_iota(jnp.int32, p.shape, 1)
        mask = jnp.logical_and(mask, col < cols_total)

    contrib = jnp.where(mask, t * (jnp.log(t) - p), 0.0)
    out_ref[0] = jnp.sum(contrib, axis=1, keepdims=True)       # (N, 1) per-batch partial


def log_belief_loss(predicted_logprob, target_prob, valid=None):
    """Pallas implementation of LogBeliefLoss.forward. Returns a scalar float32."""
    assert predicted_logprob.shape == target_prob.shape
    N = predicted_logprob.shape[0]
    D = int(np.prod(predicted_logprob.shape[1:]))
    itemsize = max(predicted_logprob.dtype.itemsize, target_prob.dtype.itemsize)

    p2 = predicted_logprob.reshape(N, D)           # reshape only: no HBM copy
    t2 = target_prob.reshape(N, D)

    if D % 128 == 0:
        # ---- main path: lane/sublane-dense (N, R, lane) view, zero-copy --------------------
        lane = next(l for l in (512, 384, 256, 128) if D % l == 0)
        R = D // lane
        p3 = p2.reshape(N, R, lane)
        t3 = t2.reshape(N, R, lane)

        tr_target = max(16, (_TILE_INPUT_BYTES // (lane * itemsize)) // 16 * 16)
        if R <= tr_target:
            if N == 1 and R >= 32:
                # keep >= 2 parallel grid steps so v7x's second TensorCore has work
                tr = (((R + 1) // 2) + 15) // 16 * 16
            else:
                tr = R                               # full-extent block (no 8-divisibility needed)
        else:
            tr = tr_target                           # multiple of 16 (bf16-pack friendly)
        num_tiles = -(-R // tr)
        ragged_rows = (R % tr) != 0

        kernel = functools.partial(_kl_rows_kernel, rows_total=R, tile_rows=tr,
                                   ragged_rows=ragged_rows)
        partials = pl.pallas_call(
            kernel,
            grid=(N, num_tiles),
            in_specs=[pl.BlockSpec((1, tr, lane), lambda n, t: (n, t, 0)),
                      pl.BlockSpec((1, tr, lane), lambda n, t: (n, t, 0))],
            out_specs=pl.BlockSpec((1, 1, lane), lambda n, t: (n, t, 0)),
            out_shape=jax.ShapeDtypeStruct((N, num_tiles, lane), jnp.float32),
            compiler_params=pltpu.CompilerParams(
                dimension_semantics=("parallel", "parallel"),
                vmem_limit_bytes=_VMEM_LIMIT_BYTES),
        )(p3, t3)
        per_batch = jnp.sum(partials, axis=(1, 2))               # (N,)
    else:
        # ---- fallback: tile the raw (N, D) layout; mask the ragged tail in-kernel ----------
        td = max(128, (_TILE_INPUT_BYTES // (max(N, 1) * itemsize)) // 128 * 128)
        td = min(td, -(-D // 128) * 128)
        num_tiles = -(-D // td)
        ragged_cols = (D % td) != 0

        kernel = functools.partial(_kl_flat_kernel, cols_total=D, tile_cols=td,
                                   ragged_cols=ragged_cols)
        partials = pl.pallas_call(
            kernel,
            grid=(num_tiles,),
            in_specs=[pl.BlockSpec((N, td), lambda j: (0, j)),
                      pl.BlockSpec((N, td), lambda j: (0, j))],
            out_specs=pl.BlockSpec((1, N, 1), lambda j: (j, 0, 0)),
            out_shape=jax.ShapeDtypeStruct((num_tiles, N, 1), jnp.float32),
            compiler_params=pltpu.CompilerParams(
                dimension_semantics=("parallel",),
                vmem_limit_bytes=_VMEM_LIMIT_BYTES),
        )(p2, t2)
        per_batch = jnp.sum(partials[:, :, 0], axis=0)           # (N,)

    if valid is not None:
        vb = jnp.asarray(valid).astype(jnp.bool_)
        # select (not multiply): NaN partials of invalid batches are dropped, exactly like
        # the PyTorch boolean-mask indexing.
        per_batch = jnp.where(vb, per_batch, 0.0)
    return jnp.sum(per_batch)


def _reference(predicted_logprob, target_prob, valid=None):
    """Plain-JAX reference mirroring the PyTorch module."""
    p = predicted_logprob.astype(jnp.float32)
    t = target_prob.astype(jnp.float32)
    kl = jnp.where(t > 0, t * (jnp.log(t) - p), 0.0)
    mask = ~jnp.isinf(p)
    if valid is not None:
        extra = (1,) * (p.ndim - 1)
        mask = mask & jnp.asarray(valid).reshape((p.shape[0],) + extra)
    return jnp.sum(jnp.where(mask, kl, 0.0))


if __name__ == "__main__":
    key = jax.random.PRNGKey(0)
    k1, k2, k3, k4, k5, k6 = jax.random.split(key, 6)

    def check(pred, targ, valid, rtol=1e-5, atol=1e-4):
        out = jax.block_until_ready(log_belief_loss(pred, targ, valid))
        ref = jax.block_until_ready(_reference(pred, targ, valid))
        np.testing.assert_allclose(np.asarray(out), np.asarray(ref), rtol=rtol, atol=atol)

    # ---- 4-D main path: (N, C, H, W) = (2, 4, 16, 16), D = 1024 (multiple of 128) ----------
    N, C, H, W = 2, 4, 16, 16
    target_prob = jax.nn.softmax(jax.random.normal(k1, (N, C * H * W), jnp.float32),
                                 axis=-1).reshape(N, C, H, W)
    pred_lp = jax.nn.log_softmax(jax.random.normal(k2, (N, C * H * W), jnp.float32),
                                 axis=-1).reshape(N, C, H, W)
    pred_lp = pred_lp.at[0, 0, 0, :4].set(-jnp.inf)
    pred_lp = pred_lp.at[1, 2, 5, 7].set(-jnp.inf)

    check(pred_lp, target_prob, jnp.array([True, True]))
    check(pred_lp, target_prob, None)
    check(pred_lp, target_prob, jnp.array([True, False]))     # per-batch gate

    # bf16 inputs: half the HBM bytes; the kernel upcasts after the DMA
    check(pred_lp.astype(jnp.bfloat16), target_prob.astype(jnp.bfloat16),
          jnp.array([True, True]))

    # ---- 3-D fallback path: (N, H, W) = (2, 10, 50), D = 500 (not a multiple of 128) -------
    targ3 = jax.nn.softmax(jax.random.normal(k3, (2, 500), jnp.float32),
                           axis=-1).reshape(2, 10, 50)
    pred3 = jax.nn.log_softmax(jax.random.normal(k4, (2, 500), jnp.float32),
                               axis=-1).reshape(2, 10, 50)
    pred3 = pred3.at[0, 3, :5].set(-jnp.inf)
    check(pred3, targ3, jnp.array([True, True]))
    check(pred3, targ3, jnp.array([False, True]))

    # ---- single-sample main path with row tiling + ragged-row mask: (1, 12, 40, 40) --------
    targ1 = jax.nn.softmax(jax.random.normal(k5, (1, 12 * 40 * 40), jnp.float32),
                           axis=-1).reshape(1, 12, 40, 40)
    pred1 = jax.nn.log_softmax(jax.random.normal(k6, (1, 12 * 40 * 40), jnp.float32),
                               axis=-1).reshape(1, 12, 40, 40)
    pred1 = pred1.at[0, 5, 7, :3].set(-jnp.inf)
    check(pred1, targ1, None)
    check(pred1, targ1, jnp.array([True]))

    print("KERNEL_OK")
</pallas_src>

<mosaic_0001>
module attributes {stable_mosaic.version = 11 : i64} {
  func.func @_kl_rows_kernel(%arg0: i32, %arg1: i32, %arg2: memref<1x2x512xf32, #tpu.memory_space<vmem>>, %arg3: memref<1x2x512xf32, #tpu.memory_space<vmem>>, %arg4: memref<1x1x512xf32, #tpu.memory_space<vmem>>) attributes {dimension_semantics = [#tpu.dimension_semantics<parallel>, #tpu.dimension_semantics<parallel>], iteration_bounds = array<i64: 2, 1>, scalar_prefetch = 0 : i64, scratch_operands = 0 : i64, tpu.core_type = #tpu.core_type<tc>, window_params = [{transform_indices = @transform_0, window_bounds = array<i64: 1, 2, 512>}, {transform_indices = @transform_1, window_bounds = array<i64: 1, 2, 512>}, {transform_indices = @transform_2, window_bounds = array<i64: 1, 1, 512>}]} {
    %c0 = arith.constant 0 : index
    %c0_0 = arith.constant 0 : index
    %c0_1 = arith.constant 0 : index
    %0 = vector.load %arg2[%c0, %c0_0, %c0_1] : memref<1x2x512xf32, #tpu.memory_space<vmem>>, vector<1x2x512xf32>
    %c0_2 = arith.constant 0 : index
    %c0_3 = arith.constant 0 : index
    %c0_4 = arith.constant 0 : index
    %1 = vector.load %arg3[%c0_2, %c0_3, %c0_4] : memref<1x2x512xf32, #tpu.memory_space<vmem>>, vector<1x2x512xf32>
    %cst = arith.constant 0.000000e+00 : f32
    %2 = vector.broadcast %cst : f32 to vector<1x2x512xf32>
    %3 = arith.cmpf ogt, %1, %2 : vector<1x2x512xf32>
    %4 = math.absf %0 : vector<1x2x512xf32>
    %cst_5 = arith.constant 0x7F800000 : f32
    %5 = vector.broadcast %cst_5 : f32 to vector<1x2x512xf32>
    %6 = arith.cmpf one, %4, %5 : vector<1x2x512xf32>
    %7 = arith.andi %3, %6 : vector<1x2x512xi1>
    %8 = math.log %1 : vector<1x2x512xf32>
    %9 = arith.subf %8, %0 : vector<1x2x512xf32>
    %10 = arith.mulf %1, %9 : vector<1x2x512xf32>
    %cst_6 = arith.constant 0.000000e+00 : f32
    %11 = vector.broadcast %cst_6 : f32 to vector<1x2x512xf32>
    %12 = arith.select %7, %10, %11 : vector<1x2x512xi1>, vector<1x2x512xf32>
    %cst_7 = arith.constant dense<0.000000e+00> : vector<1x512xf32>
    %13 = vector.multi_reduction <add>, %12, %cst_7 [1] : vector<1x2x512xf32> to vector<1x512xf32>
    %14 = vector.shape_cast %13 : vector<1x512xf32> to vector<1x1x512xf32>
    %c0_8 = arith.constant 0 : index
    %c0_9 = arith.constant 0 : index
    %c0_10 = arith.constant 0 : index
    %15 = vector.load %arg4[%c0_8, %c0_9, %c0_10] : memref<1x1x512xf32, #tpu.memory_space<vmem>>, vector<1x1x512xf32>
    tpu.vector_store %arg4[%c0_8, %c0_9, %c0_10], %14 {strides = array<i32>} : memref<1x1x512xf32, #tpu.memory_space<vmem>>, vector<1x1x512xf32>,
    return
  }
  func.func @transform_0(%arg0: i32, %arg1: i32) -> (i32, i32, i32) {
    %c0_i32 = arith.constant 0 : i32
    %c0_i32_0 = arith.constant 0 : i32
    return %arg0, %arg1, %c0_i32 : i32, i32, i32
  }
  func.func @transform_1(%arg0: i32, %arg1: i32) -> (i32, i32, i32) {
    %c0_i32 = arith.constant 0 : i32
    %c0_i32_0 = arith.constant 0 : i32
    return %arg0, %arg1, %c0_i32 : i32, i32, i32
  }
  func.func @transform_2(%arg0: i32, %arg1: i32) -> (i32, i32, i32) {
    %c0_i32 = arith.constant 0 : i32
    %c0_i32_0 = arith.constant 0 : i32
    return %arg0, %arg1, %c0_i32 : i32, i32, i32
  }
}

</mosaic_0001>

<bundles_post_ra>
// kernel: tpu_custom_call.1
= control target key start
LH: loop header
LB: loop body
LE: loop exit
PB: predicated region body
PF: predicated region fallthrough
CT: control target
= control target key end

     0   :  { %7 = vsyncpa [#allocation3], 0  ;;  %s925_s0 = inlined_call_operand.hbm [shape: f32[2,2,512], index: 0, kind: input, shape index: {}]   ;;  %s926_s1 = inlined_call_operand.hbm [shape: f32[2,2,512], index: 1, kind: input, shape index: {}]   ;;  %s927_s2 = inlined_call_operand.hbm [shape: f32[2,1,512], index: 2, kind: output, shape index: {}]  }
   0x1   :  { %9 = vsyncpa [#allocation3 + $0x1], 0 }
   0x2   :  { %10 = vsyncpa [#allocation6], 0 }
   0x3   :  { %12 = vsyncpa [#allocation6 + $0x1], 0 }
   0x4   :  { %13 = vsyncpa [#allocation4], 0 }
   0x5   :  { %15 = vsyncpa [#allocation4 + $0x1], 0  ;;  %s704_s9 = smov 0   ;;  %s706_s10 = smov 0  }
   0x6   :  { %s708_s11 = smov 0   ;;  %s710_s12 = smov 0  }
   0x7   :  { %s712_s13 = smov 0   ;;  %s714_s14 = smov 0  }
   0x8 LB: > { %s443_s15 = sadd.s32 4294967295, %s682_s14   ;;  %s444_s16 = sadd.s32 4294967294, %s682_s14   ;;  %s682_s14 = sphi %s714_s14, %s21_s14   ;;  %s678_s13 = sphi %s712_s13, %s947_s13   ;;  %s674_s12 = sphi %s710_s12, %s946_s12   ;;  %s670_s11 = sphi %s708_s11, %s945_s11   ;;  %s666_s10 = sphi %s706_s10, %s944_s10   ;;  %s662_s9 = sphi %s704_s9, %s943_s9  }
   0x9   : > { %s33_s17 = sadd.s32 1, %s678_s13  ;;  %s42_s18 = sadd.s32 1, %s670_s11 }
   0xa   : > { %p35_p0 = scmp.ge.s32.totalorder %s33_s17, 2  ;;  %p49_p1 = scmp.ne.s32.totalorder %s670_s11, %s666_s10 }
   0xb   : > { %p50_p2 = scmp.eq.s32.totalorder %s682_s14, 0  ;;  %p55_p3 = scmp.ne.s32.totalorder %s666_s10, %s662_s9 }
   0xc   : > { %s949_s17 = smov (%p35_p0, %s33_s17), 0  ;;  %p56_p5 = scmp.eq.s32.totalorder %s443_s15, 0 }
   0xd   : > { %p745_p4 = por %p50_p2, %p49_p1  ;;  %s37_s20 = ssub.s32 %s678_s13, %s949_s17 }
   0xe   : > { %p109_p6 = scmp.eq.s32.totalorder %s443_s15, 1  ;;  %p40_p7 = scmp.eq.s32.totalorder %s37_s20, 0 }
   0xf   : > { %p751_p8 = por %p56_p5, %p55_p3  ;;  %p115_p10 = scmp.eq.s32.totalorder %s444_s16, 1 }
  0x10   : > { %p755_p9 = por %p109_p6, %p49_p1  ;;  %p482_p13 = scmp.lt.s32.totalorder %s682_s14, 2 }
  0x11   : > { %s931_s21 = scalar_select %p751_p8, 1, 0 }
  0x12   : > { %s932_s22 = scalar_select %p755_p9, 1, 0 }
  0x13   : > { %s760_s23 = scalar_select %p40_p7, %s670_s11, %s42_s18  }
  0x14   : > { %p762_p11 = por %p115_p10, %p55_p3  ;;  %s769_s25 = sand.u32 1, %s670_s11  }
  0x15   : > { %s447_s26 = sshll.u32 %s769_s25, 3  ;;  %s462_s27 = sshll.u32 %s678_s13, 7 }
  0x16   : > { %s933_s24 = scalar_select %p762_p11, 1, 0 }
  0x17   : > { %s778_s30 = scalar_lea.hbm %s925_s0, %s462_s27  ;;  %s139_s3 = scalar_lea.vmem [#allocation2], %s447_s26 }
  0x18   : > { %s149_s4 = sshll.u32 %s139_s3, 4  ;;  %p786_p0 = pnand %p482_p13, %p745_p4  ;;  %s782_s4 = int_to_ptr.vmem [resolvable:$true] %s149_s4 }
  0x19   : > { %s136_s6 = scalar_lea.sflag [#allocation3], %s769_s25  ;;  %s536_s7 = scalar_lea.hbm %s778_s30, 128 }
  0x1a   : > { %p537_p3 = scmp.ne.s32.totalorder %s778_s30, %s536_s7  ;;  %p538_p5 = pneg %p786_p0 }
  0x1b   : > { %s541_s16 = scalar_lea.hbm %s925_s0, 256  ;;  %p542_p4 = scmp.lt.u32.totalorder %s778_s30, %s925_s0 }
  0x1c   : > { %p539_p6 = pnand %p538_p5, %p537_p3  ;;  %p543_p10 = scmp.lt.u32.totalorder %s541_s16, %s536_s7 }
  0x1d   : > { %p545_p12 = scmp.lt.u32.totalorder %s536_s7, %s778_s30 }
  0x1e   : > { %p540_p7 = pneg %p539_p6  ;;  %p544_p13 = por %p543_p10, %p542_p4 }
  0x20   : > { %p546_p1 = por %p545_p12, %p544_p13 }
  0x22   : > { %p547_p2 = pnand %p546_p1, %p540_p7 }
  0x24   : > { %550 = shalt.err (!%p547_p2)
}
  0x25   : > { %s551_s20 = scalar_lea.vmem %s782_s4, 128  ;;  %s684_s28 = smov [#allocation2]  }
  0x26   : > { %p552_p3 = scmp.ne.s32.totalorder %s782_s4, %s551_s20  ;;  %s556_s29 = sshll.u32 %s684_s28, 4  ;;  %s557_s29 = int_to_ptr.vmem [resolvable:$false] %s556_s29 }
  0x27   : > { %s558_s3 = scalar_lea.vmem %s557_s29, 256  ;;  %p559_p9 = scmp.lt.s32.totalorder %s782_s4, %s557_s29 }
  0x28   : > { %p554_p6 = pnand %p552_p3, %p538_p5  ;;  %p560_p4 = scmp.lt.s32.totalorder %s558_s3, %s551_s20 }
  0x2a   : > { %p555_p11 = pneg %p554_p6  ;;  %p561_p10 = por %p560_p4, %p559_p9 }
  0x2c   : > { %p562_p12 = pnand %p561_p10, %p555_p11 }
  0x2e   : > { %565 = shalt.err (!%p562_p12)
}
  0x2f   : > { %474 = dma.hbm_to_vmem [thread:$0]  (!%p786_p0), %s778_s30, 128, %s782_s4, %s136_s6  }
  0x30   : > { %p935_p1 = scmp.lt.s32.totalorder %s682_s14, 3  ;;  %p936_p2 = scmp.ge.s32.totalorder %s682_s14, 1 }
  0x31   : > { %s831_s16 = scalar_lea.hbm %s926_s1, %s462_s27  ;;  %s160_s18 = scalar_lea.vmem [#allocation5], %s447_s26 }
  0x32   : > { %p822_p7 = pnand %p936_p2, %p935_p1  ;;  %s170_s19 = sshll.u32 %s160_s18, 4  ;;  %s171_s19 = int_to_ptr.vmem [resolvable:$true] %s170_s19 }
  0x33   : > { %s157_s30 = scalar_lea.sflag [#allocation6], %s769_s25  ;;  %s566_s4 = scalar_lea.hbm %s831_s16, 128 }
  0x34   : > { %s937_s7 = scalar_select %p822_p7, 1, 0 }
  0x35   : > { %p567_p9 = scmp.ne.s32.totalorder %s831_s16, %s566_s4  ;;  %s571_s27 = scalar_lea.hbm %s926_s1, 256 }
  0x36   : > { %p572_p3 = scmp.lt.u32.totalorder %s831_s16, %s926_s1  ;;  %p573_p6 = scmp.lt.u32.totalorder %s571_s27, %s566_s4 }
  0x37   : > { %p569_p11 = pnand %p567_p9, %p538_p5  ;;  %p575_p10 = scmp.lt.u32.totalorder %s566_s4, %s831_s16 }
  0x38   : > { %p574_p4 = por %p573_p6, %p572_p3 }
  0x39   : > { %p570_p13 = pneg %p569_p11 }
  0x3a   : > { %p576_p12 = por %p575_p10, %p574_p4 }
  0x3c   : > { %p577_p1 = pnand %p576_p12, %p570_p13 }
  0x3e   : > { %580 = shalt.err (!%p577_p1)
}
  0x3f   : > { %s581_s25 = scalar_lea.vmem %s171_s19, 128  ;;  %s685_s26 = smov [#allocation5]  }
  0x40   : > { %p582_p2 = scmp.ne.s32.totalorder %s171_s19, %s581_s25  ;;  %s586_s3 = sshll.u32 %s685_s26, 4  ;;  %s587_s3 = int_to_ptr.vmem [resolvable:$false] %s586_s3 }
  0x41   : > { %s588_s8 = scalar_lea.vmem %s587_s3, 256  ;;  %p589_p8 = scmp.lt.s32.totalorder %s171_s19, %s587_s3 }
  0x42   : > { %p584_p9 = pnand %p582_p2, %p538_p5  ;;  %p590_p7 = scmp.lt.s32.totalorder %s588_s8, %s581_s25 }
  0x44   : > { %p585_p11 = pneg %p584_p9  ;;  %p591_p3 = por %p590_p7, %p589_p8 }
  0x46   : > { %p592_p6 = pnand %p591_p3, %p585_p11 }
  0x48   : > { %595 = shalt.err (!%p592_p6)
}
  0x49   : > { %477 = dma.hbm_to_vmem [thread:$0]  (!%p786_p0), %s831_s16, 128, %s171_s19, %s157_s30  }
  0x4a   : > { %p938_p13 = scmp.ne.s32.totalorder %s937_s7, 0 }
  0x4b   : > { %s858_s15 = sand.u32 (!%p938_p13), 1, %s666_s10   ;;  %p939_p5 = scmp.ne.s32.totalorder (!%p938_p13), %s931_s21, 0 }
  0x4c   : > { %179 = sbr.rel (%p938_p13) target bundleno = 146 (0x92), region = 28  ;;  %s454_s18 = sshll.u32 (!%p938_p13), %s858_s15, 3 }
  0x4d   : > { %s182_s4 = scalar_lea.sflag (!%p938_p13), [#allocation3], %s858_s15  ;;  %s185_s6 = scalar_lea.vmem (!%p938_p13), [#allocation2], %s454_s18 }
  0x53   : > { %649 = dma.done.wait (%p939_p5), %s182_s4, 128  }
  0x54   : > { %651 = vsyncadd (%p939_p5), %s182_s4, 4294967168  ;;  %s191_s5 = scalar_lea.sflag [#allocation6], %s858_s15  ;;  %s194_s16 = scalar_lea.vmem [#allocation5], %s454_s18 }
  0x55   : > { %653 = dma.done.wait (%p939_p5), %s191_s5, 128  }
  0x56   : > { %655 = vsyncadd (%p939_p5), %s191_s5, 4294967168  ;;  %v221_v0 = vld [vmem:[%s194_s16] sm:$0xff]  ;;  %v220_v1 = vld [vmem:[%s185_s6] sm:$0xff]  ;;  %v686_v2 = vmov 1983009808   ;;  %v236_v4 = vlaneseq  ;;  %vm253_vm3 = vcmask 1041408  }
  0x57   : > { %534 = vlog2.f32 %v221_v0  ;;  %v234_v3 = vunpack.c.l.s4 %v686_v2  ;;  %v223_v5 = vand.u32 2147483647, %v220_v1  ;;  %vm222_vm0 = vcmp.gt.f32.partialorder %v221_v0, 0.0  ;;  %s456_s21 = sshll.u32 %s858_s15, 2  ;;  %s464_s30 = sshll.u32 %s674_s12, 6 }
  0x58   : > { %v237_v8 = vshrl.u32 %v236_v4, 7  ;;  %v687_v27 = vmov 1966171168   ;;  %s219_s7 = scalar_lea.vmem [#allocation7], %s456_s21  ;;  %vm313_vm4 = vcmp.lt.s32.totalorder %v236_v4, 512  ;;  %s878_s28 = scalar_lea.hbm %s927_s2, %s464_s30 }
  0x59   : > { %v235_v7 = vunpack.c.0.s8 %v234_v3  ;;  %vm224_vm1 = vcmp.ne.f32.partialorder %v223_v5, inf  ;;  %v289_v28 = vunpack.c.l.s4 %v687_v27  ;;  %s333_s19 = sshll.u32 %s219_s7, 4  ;;  %s317_s29 = scalar_lea.sflag [#allocation4], %s858_s15  ;;  %s873_s19 = int_to_ptr.vmem [resolvable:$true] %s333_s19 }
  0x5a   : > { %vm225_vm2 = vmand %vm222_vm0, %vm224_vm1  ;;  %s596_s25 = scalar_lea.vmem %s873_s19, 64  ;;  %p940_p0 = scmp.ne.s32.totalorder %s932_s22, 0 }
  0x5b   : > { %v238_v11 = vsub.s32 %v235_v7, %v237_v8  ;;  %v290_v37 = vunpack.c.0.s8 %v289_v28  ;;  %p597_p8 = scmp.ne.s32.totalorder %s873_s19, %s596_s25  ;;  %s688_s12 = smov [#allocation7]  }
  0x5c   : > { %s600_s26 = sshll.u32 %s688_s12, 4  ;;  %s601_s26 = int_to_ptr.vmem [resolvable:$false] %s600_s26 }
  0x5d   : > { %v293_v49 = vsub.s32 %v290_v37, %v237_v8  ;;  %p598_p7 = pnand %p597_p8, %p940_p0  ;;  %s602_s3 = scalar_lea.vmem %s601_s26, 128 }
  0x5e   : > { %p603_p10 = scmp.lt.s32.totalorder %s873_s19, %s601_s26  ;;  %p604_p12 = scmp.lt.s32.totalorder %s602_s3, %s596_s25 }
  0x5f   : > { %p599_p4 = pneg %p598_p7 }
  0x60   : > { %p605_p1 = por %p604_p12, %p603_p10 }
  0x61   : > { %v535_v6 = vpop.eup %534 }
  0x62   : > { %v227_v9 = vmul.f32 0.6931472, %v535_v6  ;;  %p606_p2 = pnand %p605_p1, %p599_p4 }
  0x64   : > { %v228_v10 = vsub.f32 %v227_v9, %v220_v1 }
  0x66   : > { %v229_v12 = vmul.f32 %v228_v10, %v221_v0 }
  0x68   : > { %v230_v13 = vsel %vm225_vm2, %v229_v12, 0.0 }
  0x69   : > { %v232_v14 = vcombine.high %v230_v13, %v230_v13  ;;  %v239_v15 = vrot.slane %v230_v13, %v238_v11 }
  0x6b   : > { %v246_v16 = vrot.slane %v232_v14, %v238_v11  ;;  %v247_v17 = vcombine.high %v239_v15, %v239_v15  ;;  %v254_v18 = vsel %vm253_vm3, %v239_v15, 0.0 }
  0x6c   : > { %v255_v19 = vrot.slane %v254_v18, 4 }
  0x6d   : > { %v248_v20 = vcombine.high %v246_v16, %v246_v16  ;;  %v261_v21 = vsel %vm253_vm3, %v247_v17, 0.0  ;;  %v268_v22 = vsel %vm253_vm3, %v246_v16, 0.0 }
  0x6e   : > { %v256_v23 = vadd.f32 %v255_v19, %v254_v18  ;;  %v262_v24 = vrot.slane %v261_v21, 4  ;;  %v269_v25 = vrot.slane %v268_v22, 4 }
  0x6f   : > { %v275_v26 = vsel %vm253_vm3, %v248_v20, 0.0 }
  0x70   : > { %v257_v29 = vrot.slane %v256_v23, 2  ;;  %v263_v30 = vadd.f32 %v262_v24, %v261_v21  ;;  %v270_v31 = vadd.f32 %v269_v25, %v268_v22  ;;  %v276_v32 = vrot.slane %v275_v26, 4 }
  0x72   : > { %v258_v33 = vadd.f32 %v257_v29, %v256_v23  ;;  %v264_v34 = vrot.slane %v263_v30, 2  ;;  %v271_v35 = vrot.slane %v270_v31, 2  ;;  %v277_v36 = vadd.f32 %v276_v32, %v275_v26 }
  0x74   : > { %v259_v38 = vrot.slane %v258_v33, 1  ;;  %v265_v39 = vadd.f32 %v264_v34, %v263_v30  ;;  %v272_v40 = vadd.f32 %v271_v35, %v270_v31  ;;  %v278_v41 = vrot.slane %v277_v36, 2 }
  0x76   : > { %v260_v42 = vadd.f32 %v259_v38, %v258_v33  ;;  %v266_v43 = vrot.slane %v265_v39, 1  ;;  %v273_v44 = vrot.slane %v272_v40, 1  ;;  %v279_v45 = vadd.f32 %v278_v41, %v277_v36 }
  0x78   : > { %v267_v46 = vadd.f32 %v266_v43, %v265_v39  ;;  %v274_v47 = vadd.f32 %v273_v44, %v272_v40  ;;  %v280_v48 = vrot.slane %v279_v45, 1 }
  0x7a   : > { %v281_v50 = vadd.f32 %v280_v48, %v279_v45  ;;  %v286_v51 = vcombine.low %v260_v42, %v267_v46 }
  0x7c   : > { %v287_v52 = vcombine.low %v274_v47, %v281_v50  ;;  %v294_v53 = vrot.slane %v286_v51, %v293_v49 }
  0x7e   : > { %v301_v54 = vrot.slane %v287_v52, %v293_v49 }
  0x80   : > { %v302_v55 = vcombine.low %v294_v53, %v301_v54 }
  0x82   : > { %v309_v56 = vrot.slane %v302_v55, %v293_v49 }
  0x84   : > { %315 = vst.msk [vmem:[%s219_s7] sm:$0xf] %vm313_vm4, %v309_v56 }
  0x85   : > { %609 = shalt.err (!%p606_p2)
}
  0x86   : > { %s610_s8 = scalar_lea.hbm %s878_s28, 64  ;;  %s614_s4 = scalar_lea.hbm %s927_s2, 128 }
  0x87   : > { %p611_p9 = scmp.ne.s32.totalorder %s878_s28, %s610_s8  ;;  %p615_p6 = scmp.lt.u32.totalorder %s878_s28, %s927_s2 }
  0x88   : > { %p616_p13 = scmp.lt.u32.totalorder %s614_s4, %s610_s8  ;;  %p618_p8 = scmp.lt.u32.totalorder %s610_s8, %s878_s28 }
  0x89   : > { %p612_p11 = pnand %p611_p9, %p940_p0 }
  0x8a   : > { %p617_p5 = por %p616_p13, %p615_p6 }
  0x8b   : > { %p613_p3 = pneg %p612_p11 }
  0x8c   : > { %p619_p7 = por %p618_p8, %p617_p5 }
  0x8e   : > { %p620_p4 = pnand %p619_p7, %p613_p3 }
  0x90   : > { %623 = shalt.err (!%p620_p4)
}
  0x91   : > { %469 = dma.vmem_to_hbm [thread:$0]  (%p940_p0), %s873_s19, 64, %s878_s28, %s317_s29  }
  0x92 PF: > { %s345_s16 = sand.u32 1, %s662_s9   ;;  %p941_p10 = scmp.ne.s32.totalorder %s933_s24, 0 }
  0x93   : > { %p942_p12 = scmp.ge.s32.totalorder %s682_s14, 2  ;;  %s346_s21 = scalar_lea.sflag [#allocation4], %s345_s16 }
  0x95   : > { %p479_p1 = pnand %p942_p12, %p941_p10 }
  0x97   : > { %657 = dma.done.wait (!%p479_p1), %s346_s21, 64  }
  0x98   : > { %659 = vsyncadd (!%p479_p1), %s346_s21, 4294967232  ;;  %s21_s14 = sadd.s32 1, %s682_s14   ;;  %s943_s9 = smov %s666_s10 }
  0x99   : > { %p18_p2 = scmp.ge.s32.totalorder %s21_s14, 4   ;;  %s944_s10 = smov %s670_s11 }
  0x9a   : > { %s945_s11 = smov %s760_s23  ;;  %s946_s12 = smov %s678_s13 }
  0x9b   : > { %s947_s13 = smov %s949_s17  ;;  %20 = sbr.rel (!%p18_p2) target bundleno = 8 (0x8), region = 86 }
  0xa2   :  { %351 = vsyncpa [#allocation3], 1 }
  0xa3   :  { %353 = vsyncpa [#allocation3 + $0x1], 1 }
  0xa4   :  { %354 = vsyncpa [#allocation6], 1 }
  0xa5   :  { %356 = vsyncpa [#allocation6 + $0x1], 1 }
  0xa6   :  { %357 = vsyncpa [#allocation4], 1 }
  0xa7   :  { %359 = vsyncpa [#allocation4 + $0x1], 1 }

</bundles_post_ra>
